<compile_context>
chip_gen: v6e
topology: v6e:2x2x1
jax: 0.10.0
libtpu: 0.0.40
codegen_flags: <defaults>
</compile_context>

<pallas_src>
import functools

import jax
import jax.numpy as jnp
from jax.experimental import pallas as pl
from jax.experimental.pallas import tpu as pltpu


def _softplus(x):
    # numerically stable softplus = log(1 + exp(x))
    return jnp.maximum(x, 0.0) + jnp.log1p(jnp.exp(-jnp.abs(x)))


def _perturb_kernel(x_ref, w_ref, b_ref, eps_ref, out_ref):
    # x_ref   : (TN, D)            bf16 token tile
    # w_ref   : (D, 2D)            bf16 fused [W1^T | W2^T]
    # b_ref   : (1, 2D)            bf16 fused [b1 | b2]
    # eps_ref : (aug_time, TN, D)  bf16 gaussian noise
    # out_ref : (aug_time, TN, D)  bf16 augmented output
    x = x_ref[...]                                   # bf16
    D = x.shape[-1]
    aug_time = out_ref.shape[0]

    # Single fused bf16 x bf16 -> f32 MXU matmul for both Linear layers.
    ml = jnp.dot(x, w_ref[...], preferred_element_type=jnp.float32)
    ml = ml + b_ref[...].astype(jnp.float32)

    mu = jnp.clip(ml[:, :D], -2.0, 2.0)              # (TN, D) f32
    std = jnp.clip(jnp.exp(0.5 * ml[:, D:]), 0.0, 1.0)

    xf = x.astype(jnp.float32)
    # Static (unrolled) loop over the small, compile-time-constant aug_time.
    for a in range(aug_time):
        e = mu + eps_ref[a].astype(jnp.float32) * std
        out_ref[a] = (xf + _softplus(e)).astype(out_ref.dtype)


def _round_up(n, m):
    return ((n + m - 1) // m) * m


@functools.partial(jax.jit, static_argnames=("layer_id", "layer_ids",
                                             "aug_time", "seed"))
def _perturbation_impl(x, w12t, b12, layer_id, layer_ids, aug_time, seed):
    orig_shape = x.shape
    D = orig_shape[-1]
    x2 = x.reshape(-1, D)
    N = x2.shape[0]

    # --- tile the token dimension -------------------------------------------
    # Keep blocks comfortably inside the default scoped-VMEM budget even on
    # v7x (64 MiB physical): out+eps blocks are aug_time*TN*D*2 bytes each,
    # double-buffered.
    TN = min(512, _round_up(N, 8))
    # shrink TN if aug_time * D is large so 2*(out+eps+x) blocks stay < ~24 MiB
    while TN > 8 and 2 * (2 * aug_time + 1) * TN * D * 2 > 24 * 1024 * 1024:
        TN //= 2
    TN = max(8, _round_up(TN, 8))
    N_pad = _round_up(N, TN)
    n_tiles = N_pad // TN

    if N_pad != N:
        x2 = jnp.pad(x2, ((0, N_pad - N), (0, 0)))

    # --- gaussian noise (generated outside the kernel; streamed in) ----------
    # TODO(synk): torch.randn stream cannot be reproduced bit-exactly; jax PRNG
    # noise is used instead (same distribution).
    key = jax.random.PRNGKey(seed)
    eps = jax.random.normal(key, (aug_time, N_pad, D), jnp.float32).astype(x.dtype)

    out = pl.pallas_call(
        _perturb_kernel,
        out_shape=jax.ShapeDtypeStruct((aug_time, N_pad, D), x.dtype),
        grid_spec=pltpu.PrefetchScalarGridSpec(
            num_scalar_prefetch=0,
            grid=(n_tiles,),
            in_specs=[
                pl.BlockSpec((TN, D), lambda i: (i, 0)),            # x tile
                pl.BlockSpec((D, 2 * D), lambda i: (0, 0)),         # [W1^T|W2^T]
                pl.BlockSpec((1, 2 * D), lambda i: (0, 0)),         # [b1|b2]
                pl.BlockSpec((aug_time, TN, D), lambda i: (0, i, 0)),  # eps
            ],
            out_specs=pl.BlockSpec((aug_time, TN, D), lambda i: (0, i, 0)),
        ),
        compiler_params=pltpu.CompilerParams(
            dimension_semantics=("parallel",)),
    )(x2, w12t, b12, eps)

    out = out[:, :N, :]
    # torch: features_aug.extend(h_i); torch.stack(...)  ==  concat(h_i, axis=0)
    lead = orig_shape[0]
    rest = tuple(orig_shape[1:])
    return out.reshape((aug_time * lead,) + rest)


def perturbation_forward(x, params, layer_id=None, layer_ids=(11,),
                         aug_time=8, seed=0):
    """Pallas implementation of Perturbation.forward.

    x: [S, B, D] (or any [..., D]); params = (W1, b1, W2, b2) with W of shape
    [D, D] (nn.Linear layout, y = x @ W.T + b).
    """
    if layer_id not in layer_ids:
        return x

    D = x.shape[-1]
    w1, b1, w2, b2 = params
    # Fuse the two Linear layers: one (D, 2D) operand, one (1, 2D) bias.
    w12t = jnp.concatenate([w1.T, w2.T], axis=1).astype(x.dtype)
    b12 = jnp.concatenate([b1, b2], axis=0).reshape(1, 2 * D).astype(x.dtype)

    return _perturbation_impl(x, w12t, b12, layer_id, tuple(layer_ids),
                              int(aug_time), int(seed))


if __name__ == "__main__":
    # small shapes consistent with the module (dim kept lane-aligned at 128)
    S, B, D = 8, 2, 128
    aug_time = 8
    # TODO(synk): reference module uses torch.float16; bfloat16 is used here as
    # the TPU-native half-precision dtype.
    dtype = jnp.bfloat16

    key = jax.random.PRNGKey(0)
    kx, k1, k2, k3, k4 = jax.random.split(key, 5)
    bound = 1.0 / (D ** 0.5)   # nn.Linear-style uniform init bound
    w1 = jax.random.uniform(k1, (D, D), jnp.float32, -bound, bound).astype(dtype)
    b1 = jax.random.uniform(k2, (D,), jnp.float32, -bound, bound).astype(dtype)
    w2 = jax.random.uniform(k3, (D, D), jnp.float32, -bound, bound).astype(dtype)
    b2 = jax.random.uniform(k4, (D,), jnp.float32, -bound, bound).astype(dtype)
    x = jax.random.normal(kx, (S, B, D), jnp.float32).astype(dtype)

    params = (w1, b1, w2, b2)

    # matching layer id -> augmented output [aug_time * S, B, D]
    out = perturbation_forward(x, params, layer_id=11, layer_ids=(11,),
                               aug_time=aug_time, seed=0)
    out = jax.block_until_ready(out)
    assert out.shape == (aug_time * S, B, D), out.shape
    assert out.dtype == dtype
    assert bool(jnp.all(jnp.isfinite(out.astype(jnp.float32))))

    # output must be >= x elementwise (softplus >= 0), per module semantics
    x_rep = jnp.tile(x, (aug_time, 1, 1)).astype(jnp.float32)
    assert bool(jnp.all(out.astype(jnp.float32) >= x_rep - 1e-2))

    # non-matching layer id -> identity passthrough (module semantics)
    same = perturbation_forward(x, params, layer_id=3, layer_ids=(11,),
                                aug_time=aug_time, seed=0)
    same = jax.block_until_ready(same)
    assert same.shape == x.shape

    print("KERNEL_OK")
</pallas_src>

<mosaic_0001>
module attributes {stable_mosaic.version = 11 : i64} {
  func.func @_perturb_kernel(%arg0: i32, %arg1: memref<16x128xbf16, #tpu.memory_space<vmem>>, %arg2: memref<128x256xbf16, #tpu.memory_space<vmem>>, %arg3: memref<1x256xbf16, #tpu.memory_space<vmem>>, %arg4: memref<8x16x128xbf16, #tpu.memory_space<vmem>>, %arg5: memref<8x16x128xbf16, #tpu.memory_space<vmem>>) attributes {dimension_semantics = [#tpu.dimension_semantics<parallel>], iteration_bounds = array<i64: 1>, scalar_prefetch = 0 : i64, scratch_operands = 0 : i64, tpu.core_type = #tpu.core_type<tc>, window_params = [{transform_indices = @transform_0, window_bounds = array<i64: 16, 128>}, {pipeline_mode = #tpu.pipeline_mode<synchronous>, transform_indices = @transform_1, window_bounds = array<i64: 128, 256>}, {pipeline_mode = #tpu.pipeline_mode<synchronous>, transform_indices = @transform_2, window_bounds = array<i64: 1, 256>}, {transform_indices = @transform_3, window_bounds = array<i64: 8, 16, 128>}, {transform_indices = @transform_4, window_bounds = array<i64: 8, 16, 128>}]} {
    %c0 = arith.constant 0 : index
    %c0_0 = arith.constant 0 : index
    %0 = vector.load %arg1[%c0, %c0_0] : memref<16x128xbf16, #tpu.memory_space<vmem>>, vector<16x128xbf16>
    %c0_1 = arith.constant 0 : index
    %c0_2 = arith.constant 0 : index
    %1 = vector.load %arg2[%c0_1, %c0_2] : memref<128x256xbf16, #tpu.memory_space<vmem>>, vector<128x256xbf16>
    %cst = arith.constant dense<0.000000e+00> : vector<16x256xf32>
    %2 = tpu.matmul %0, %1, %cst {dimension_numbers = #tpu.dot_dimension_numbers<[1], [0], [0], [1], [0, 0, 1, 1], [], []>} : vector<16x128xbf16>, vector<128x256xbf16>, vector<16x256xf32> -> vector<16x256xf32>
    %c0_3 = arith.constant 0 : index
    %c0_4 = arith.constant 0 : index
    %3 = vector.load %arg3[%c0_3, %c0_4] : memref<1x256xbf16, #tpu.memory_space<vmem>>, vector<1x256xbf16>
    %4 = arith.extf %3 : vector<1x256xbf16> to vector<1x256xf32>
    %5 = vector.broadcast %4 : vector<1x256xf32> to vector<16x256xf32>
    %6 = arith.addf %2, %5 : vector<16x256xf32>
    %7 = vector.extract_strided_slice %6 {offsets = [0, 0], sizes = [16, 128], strides = [1, 1]} : vector<16x256xf32> to vector<16x128xf32>
    %cst_5 = arith.constant -2.000000e+00 : f32
    %cst_6 = arith.constant 2.000000e+00 : f32
    %8 = vector.broadcast %cst_5 : f32 to vector<16x128xf32>
    %9 = arith.maximumf %8, %7 : vector<16x128xf32>
    %10 = vector.broadcast %cst_6 : f32 to vector<16x128xf32>
    %11 = arith.minimumf %10, %9 : vector<16x128xf32>
    %12 = vector.extract_strided_slice %6 {offsets = [0, 128], sizes = [16, 128], strides = [1, 1]} : vector<16x256xf32> to vector<16x128xf32>
    %cst_7 = arith.constant 5.000000e-01 : f32
    %13 = vector.broadcast %cst_7 : f32 to vector<16x128xf32>
    %14 = arith.mulf %13, %12 : vector<16x128xf32>
    %15 = math.exp %14 : vector<16x128xf32>
    %cst_8 = arith.constant 0.000000e+00 : f32
    %cst_9 = arith.constant 1.000000e+00 : f32
    %16 = vector.broadcast %cst_8 : f32 to vector<16x128xf32>
    %17 = arith.maximumf %16, %15 : vector<16x128xf32>
    %18 = vector.broadcast %cst_9 : f32 to vector<16x128xf32>
    %19 = arith.minimumf %18, %17 : vector<16x128xf32>
    %20 = arith.extf %0 : vector<16x128xbf16> to vector<16x128xf32>
    %c0_10 = arith.constant 0 : index
    %c0_11 = arith.constant 0 : index
    %c0_12 = arith.constant 0 : index
    %21 = vector.load %arg4[%c0_10, %c0_11, %c0_12] : memref<8x16x128xbf16, #tpu.memory_space<vmem>>, vector<1x16x128xbf16>
    %22 = vector.shape_cast %21 : vector<1x16x128xbf16> to vector<16x128xbf16>
    %23 = arith.extf %22 : vector<16x128xbf16> to vector<16x128xf32>
    %24 = arith.mulf %23, %19 : vector<16x128xf32>
    %25 = arith.addf %11, %24 : vector<16x128xf32>
    %cst_13 = arith.constant 0.000000e+00 : f32
    %26 = vector.broadcast %cst_13 : f32 to vector<16x128xf32>
    %27 = arith.maximumf %25, %26 : vector<16x128xf32>
    %28 = math.absf %25 : vector<16x128xf32>
    %cst_14 = arith.constant 0.000000e+00 : f32
    %29 = vector.broadcast %cst_14 : f32 to vector<16x128xf32>
    %30 = arith.subf %29, %28 : vector<16x128xf32>
    %31 = math.exp %30 : vector<16x128xf32>
    %32 = math.log1p %31 : vector<16x128xf32>
    %33 = arith.addf %27, %32 : vector<16x128xf32>
    %34 = arith.addf %20, %33 : vector<16x128xf32>
    %35 = arith.truncf %34 : vector<16x128xf32> to vector<16x128xbf16>
    %c0_15 = arith.constant 0 : index
    %c0_16 = arith.constant 0 : index
    %c0_17 = arith.constant 0 : index
    %36 = vector.load %arg5[%c0_15, %c0_16, %c0_17] : memref<8x16x128xbf16, #tpu.memory_space<vmem>>, vector<1x16x128xbf16>
    %37 = vector.shape_cast %36 : vector<1x16x128xbf16> to vector<16x128xbf16>
    %38 = vector.shape_cast %35 : vector<16x128xbf16> to vector<1x16x128xbf16>
    tpu.vector_store %arg5[%c0_15, %c0_16, %c0_17], %38 {strides = array<i32>} : memref<8x16x128xbf16, #tpu.memory_space<vmem>>, vector<1x16x128xbf16>,
    %c1 = arith.constant 1 : index
    %c0_18 = arith.constant 0 : index
    %c0_19 = arith.constant 0 : index
    %39 = vector.load %arg4[%c1, %c0_18, %c0_19] : memref<8x16x128xbf16, #tpu.memory_space<vmem>>, vector<1x16x128xbf16>
    %40 = vector.shape_cast %39 : vector<1x16x128xbf16> to vector<16x128xbf16>
    %41 = arith.extf %40 : vector<16x128xbf16> to vector<16x128xf32>
    %42 = arith.mulf %41, %19 : vector<16x128xf32>
    %43 = arith.addf %11, %42 : vector<16x128xf32>
    %cst_20 = arith.constant 0.000000e+00 : f32
    %44 = vector.broadcast %cst_20 : f32 to vector<16x128xf32>
    %45 = arith.maximumf %43, %44 : vector<16x128xf32>
    %46 = math.absf %43 : vector<16x128xf32>
    %cst_21 = arith.constant 0.000000e+00 : f32
    %47 = vector.broadcast %cst_21 : f32 to vector<16x128xf32>
    %48 = arith.subf %47, %46 : vector<16x128xf32>
    %49 = math.exp %48 : vector<16x128xf32>
    %50 = math.log1p %49 : vector<16x128xf32>
    %51 = arith.addf %45, %50 : vector<16x128xf32>
    %52 = arith.addf %20, %51 : vector<16x128xf32>
    %53 = arith.truncf %52 : vector<16x128xf32> to vector<16x128xbf16>
    %c1_22 = arith.constant 1 : index
    %c0_23 = arith.constant 0 : index
    %c0_24 = arith.constant 0 : index
    %54 = vector.load %arg5[%c1_22, %c0_23, %c0_24] : memref<8x16x128xbf16, #tpu.memory_space<vmem>>, vector<1x16x128xbf16>
    %55 = vector.shape_cast %54 : vector<1x16x128xbf16> to vector<16x128xbf16>
    %56 = vector.shape_cast %53 : vector<16x128xbf16> to vector<1x16x128xbf16>
    tpu.vector_store %arg5[%c1_22, %c0_23, %c0_24], %56 {strides = array<i32>} : memref<8x16x128xbf16, #tpu.memory_space<vmem>>, vector<1x16x128xbf16>,
    %c2 = arith.constant 2 : index
    %c0_25 = arith.constant 0 : index
    %c0_26 = arith.constant 0 : index
    %57 = vector.load %arg4[%c2, %c0_25, %c0_26] : memref<8x16x128xbf16, #tpu.memory_space<vmem>>, vector<1x16x128xbf16>
    %58 = vector.shape_cast %57 : vector<1x16x128xbf16> to vector<16x128xbf16>
    %59 = arith.extf %58 : vector<16x128xbf16> to vector<16x128xf32>
    %60 = arith.mulf %59, %19 : vector<16x128xf32>
    %61 = arith.addf %11, %60 : vector<16x128xf32>
    %cst_27 = arith.constant 0.000000e+00 : f32
    %62 = vector.broadcast %cst_27 : f32 to vector<16x128xf32>
    %63 = arith.maximumf %61, %62 : vector<16x128xf32>
    %64 = math.absf %61 : vector<16x128xf32>
    %cst_28 = arith.constant 0.000000e+00 : f32
    %65 = vector.broadcast %cst_28 : f32 to vector<16x128xf32>
    %66 = arith.subf %65, %64 : vector<16x128xf32>
    %67 = math.exp %66 : vector<16x128xf32>
    %68 = math.log1p %67 : vector<16x128xf32>
    %69 = arith.addf %63, %68 : vector<16x128xf32>
    %70 = arith.addf %20, %69 : vector<16x128xf32>
    %71 = arith.truncf %70 : vector<16x128xf32> to vector<16x128xbf16>
    %c2_29 = arith.constant 2 : index
    %c0_30 = arith.constant 0 : index
    %c0_31 = arith.constant 0 : index
    %72 = vector.load %arg5[%c2_29, %c0_30, %c0_31] : memref<8x16x128xbf16, #tpu.memory_space<vmem>>, vector<1x16x128xbf16>
    %73 = vector.shape_cast %72 : vector<1x16x128xbf16> to vector<16x128xbf16>
    %74 = vector.shape_cast %71 : vector<16x128xbf16> to vector<1x16x128xbf16>
    tpu.vector_store %arg5[%c2_29, %c0_30, %c0_31], %74 {strides = array<i32>} : memref<8x16x128xbf16, #tpu.memory_space<vmem>>, vector<1x16x128xbf16>,
    %c3 = arith.constant 3 : index
    %c0_32 = arith.constant 0 : index
    %c0_33 = arith.constant 0 : index
    %75 = vector.load %arg4[%c3, %c0_32, %c0_33] : memref<8x16x128xbf16, #tpu.memory_space<vmem>>, vector<1x16x128xbf16>
    %76 = vector.shape_cast %75 : vector<1x16x128xbf16> to vector<16x128xbf16>
    %77 = arith.extf %76 : vector<16x128xbf16> to vector<16x128xf32>
    %78 = arith.mulf %77, %19 : vector<16x128xf32>
    %79 = arith.addf %11, %78 : vector<16x128xf32>
    %cst_34 = arith.constant 0.000000e+00 : f32
    %80 = vector.broadcast %cst_34 : f32 to vector<16x128xf32>
    %81 = arith.maximumf %79, %80 : vector<16x128xf32>
    %82 = math.absf %79 : vector<16x128xf32>
    %cst_35 = arith.constant 0.000000e+00 : f32
    %83 = vector.broadcast %cst_35 : f32 to vector<16x128xf32>
    %84 = arith.subf %83, %82 : vector<16x128xf32>
    %85 = math.exp %84 : vector<16x128xf32>
    %86 = math.log1p %85 : vector<16x128xf32>
    %87 = arith.addf %81, %86 : vector<16x128xf32>
    %88 = arith.addf %20, %87 : vector<16x128xf32>
    %89 = arith.truncf %88 : vector<16x128xf32> to vector<16x128xbf16>
    %c3_36 = arith.constant 3 : index
    %c0_37 = arith.constant 0 : index
    %c0_38 = arith.constant 0 : index
    %90 = vector.load %arg5[%c3_36, %c0_37, %c0_38] : memref<8x16x128xbf16, #tpu.memory_space<vmem>>, vector<1x16x128xbf16>
    %91 = vector.shape_cast %90 : vector<1x16x128xbf16> to vector<16x128xbf16>
    %92 = vector.shape_cast %89 : vector<16x128xbf16> to vector<1x16x128xbf16>
    tpu.vector_store %arg5[%c3_36, %c0_37, %c0_38], %92 {strides = array<i32>} : memref<8x16x128xbf16, #tpu.memory_space<vmem>>, vector<1x16x128xbf16>,
    %c4 = arith.constant 4 : index
    %c0_39 = arith.constant 0 : index
    %c0_40 = arith.constant 0 : index
    %93 = vector.load %arg4[%c4, %c0_39, %c0_40] : memref<8x16x128xbf16, #tpu.memory_space<vmem>>, vector<1x16x128xbf16>
    %94 = vector.shape_cast %93 : vector<1x16x128xbf16> to vector<16x128xbf16>
    %95 = arith.extf %94 : vector<16x128xbf16> to vector<16x128xf32>
    %96 = arith.mulf %95, %19 : vector<16x128xf32>
    %97 = arith.addf %11, %96 : vector<16x128xf32>
    %cst_41 = arith.constant 0.000000e+00 : f32
    %98 = vector.broadcast %cst_41 : f32 to vector<16x128xf32>
    %99 = arith.maximumf %97, %98 : vector<16x128xf32>
    %100 = math.absf %97 : vector<16x128xf32>
    %cst_42 = arith.constant 0.000000e+00 : f32
    %101 = vector.broadcast %cst_42 : f32 to vector<16x128xf32>
    %102 = arith.subf %101, %100 : vector<16x128xf32>
    %103 = math.exp %102 : vector<16x128xf32>
    %104 = math.log1p %103 : vector<16x128xf32>
    %105 = arith.addf %99, %104 : vector<16x128xf32>
    %106 = arith.addf %20, %105 : vector<16x128xf32>
    %107 = arith.truncf %106 : vector<16x128xf32> to vector<16x128xbf16>
    %c4_43 = arith.constant 4 : index
    %c0_44 = arith.constant 0 : index
    %c0_45 = arith.constant 0 : index
    %108 = vector.load %arg5[%c4_43, %c0_44, %c0_45] : memref<8x16x128xbf16, #tpu.memory_space<vmem>>, vector<1x16x128xbf16>
    %109 = vector.shape_cast %108 : vector<1x16x128xbf16> to vector<16x128xbf16>
    %110 = vector.shape_cast %107 : vector<16x128xbf16> to vector<1x16x128xbf16>
    tpu.vector_store %arg5[%c4_43, %c0_44, %c0_45], %110 {strides = array<i32>} : memref<8x16x128xbf16, #tpu.memory_space<vmem>>, vector<1x16x128xbf16>,
    %c5 = arith.constant 5 : index
    %c0_46 = arith.constant 0 : index
    %c0_47 = arith.constant 0 : index
    %111 = vector.load %arg4[%c5, %c0_46, %c0_47] : memref<8x16x128xbf16, #tpu.memory_space<vmem>>, vector<1x16x128xbf16>
    %112 = vector.shape_cast %111 : vector<1x16x128xbf16> to vector<16x128xbf16>
    %113 = arith.extf %112 : vector<16x128xbf16> to vector<16x128xf32>
    %114 = arith.mulf %113, %19 : vector<16x128xf32>
    %115 = arith.addf %11, %114 : vector<16x128xf32>
    %cst_48 = arith.constant 0.000000e+00 : f32
    %116 = vector.broadcast %cst_48 : f32 to vector<16x128xf32>
    %117 = arith.maximumf %115, %116 : vector<16x128xf32>
    %118 = math.absf %115 : vector<16x128xf32>
    %cst_49 = arith.constant 0.000000e+00 : f32
    %119 = vector.broadcast %cst_49 : f32 to vector<16x128xf32>
    %120 = arith.subf %119, %118 : vector<16x128xf32>
    %121 = math.exp %120 : vector<16x128xf32>
    %122 = math.log1p %121 : vector<16x128xf32>
    %123 = arith.addf %117, %122 : vector<16x128xf32>
    %124 = arith.addf %20, %123 : vector<16x128xf32>
    %125 = arith.truncf %124 : vector<16x128xf32> to vector<16x128xbf16>
    %c5_50 = arith.constant 5 : index
    %c0_51 = arith.constant 0 : index
    %c0_52 = arith.constant 0 : index
    %126 = vector.load %arg5[%c5_50, %c0_51, %c0_52] : memref<8x16x128xbf16, #tpu.memory_space<vmem>>, vector<1x16x128xbf16>
    %127 = vector.shape_cast %126 : vector<1x16x128xbf16> to vector<16x128xbf16>
    %128 = vector.shape_cast %125 : vector<16x128xbf16> to vector<1x16x128xbf16>
    tpu.vector_store %arg5[%c5_50, %c0_51, %c0_52], %128 {strides = array<i32>} : memref<8x16x128xbf16, #tpu.memory_space<vmem>>, vector<1x16x128xbf16>,
    %c6 = arith.constant 6 : index
    %c0_53 = arith.constant 0 : index
    %c0_54 = arith.constant 0 : index
    %129 = vector.load %arg4[%c6, %c0_53, %c0_54] : memref<8x16x128xbf16, #tpu.memory_space<vmem>>, vector<1x16x128xbf16>
    %130 = vector.shape_cast %129 : vector<1x16x128xbf16> to vector<16x128xbf16>
    %131 = arith.extf %130 : vector<16x128xbf16> to vector<16x128xf32>
    %132 = arith.mulf %131, %19 : vector<16x128xf32>
    %133 = arith.addf %11, %132 : vector<16x128xf32>
    %cst_55 = arith.constant 0.000000e+00 : f32
    %134 = vector.broadcast %cst_55 : f32 to vector<16x128xf32>
    %135 = arith.maximumf %133, %134 : vector<16x128xf32>
    %136 = math.absf %133 : vector<16x128xf32>
    %cst_56 = arith.constant 0.000000e+00 : f32
    %137 = vector.broadcast %cst_56 : f32 to vector<16x128xf32>
    %138 = arith.subf %137, %136 : vector<16x128xf32>
    %139 = math.exp %138 : vector<16x128xf32>
    %140 = math.log1p %139 : vector<16x128xf32>
    %141 = arith.addf %135, %140 : vector<16x128xf32>
    %142 = arith.addf %20, %141 : vector<16x128xf32>
    %143 = arith.truncf %142 : vector<16x128xf32> to vector<16x128xbf16>
    %c6_57 = arith.constant 6 : index
    %c0_58 = arith.constant 0 : index
    %c0_59 = arith.constant 0 : index
    %144 = vector.load %arg5[%c6_57, %c0_58, %c0_59] : memref<8x16x128xbf16, #tpu.memory_space<vmem>>, vector<1x16x128xbf16>
    %145 = vector.shape_cast %144 : vector<1x16x128xbf16> to vector<16x128xbf16>
    %146 = vector.shape_cast %143 : vector<16x128xbf16> to vector<1x16x128xbf16>
    tpu.vector_store %arg5[%c6_57, %c0_58, %c0_59], %146 {strides = array<i32>} : memref<8x16x128xbf16, #tpu.memory_space<vmem>>, vector<1x16x128xbf16>,
    %c7 = arith.constant 7 : index
    %c0_60 = arith.constant 0 : index
    %c0_61 = arith.constant 0 : index
    %147 = vector.load %arg4[%c7, %c0_60, %c0_61] : memref<8x16x128xbf16, #tpu.memory_space<vmem>>, vector<1x16x128xbf16>
    %148 = vector.shape_cast %147 : vector<1x16x128xbf16> to vector<16x128xbf16>
    %149 = arith.extf %148 : vector<16x128xbf16> to vector<16x128xf32>
    %150 = arith.mulf %149, %19 : vector<16x128xf32>
    %151 = arith.addf %11, %150 : vector<16x128xf32>
    %cst_62 = arith.constant 0.000000e+00 : f32
    %152 = vector.broadcast %cst_62 : f32 to vector<16x128xf32>
    %153 = arith.maximumf %151, %152 : vector<16x128xf32>
    %154 = math.absf %151 : vector<16x128xf32>
    %cst_63 = arith.constant 0.000000e+00 : f32
    %155 = vector.broadcast %cst_63 : f32 to vector<16x128xf32>
    %156 = arith.subf %155, %154 : vector<16x128xf32>
    %157 = math.exp %156 : vector<16x128xf32>
    %158 = math.log1p %157 : vector<16x128xf32>
    %159 = arith.addf %153, %158 : vector<16x128xf32>
    %160 = arith.addf %20, %159 : vector<16x128xf32>
    %161 = arith.truncf %160 : vector<16x128xf32> to vector<16x128xbf16>
    %c7_64 = arith.constant 7 : index
    %c0_65 = arith.constant 0 : index
    %c0_66 = arith.constant 0 : index
    %162 = vector.load %arg5[%c7_64, %c0_65, %c0_66] : memref<8x16x128xbf16, #tpu.memory_space<vmem>>, vector<1x16x128xbf16>
    %163 = vector.shape_cast %162 : vector<1x16x128xbf16> to vector<16x128xbf16>
    %164 = vector.shape_cast %161 : vector<16x128xbf16> to vector<1x16x128xbf16>
    tpu.vector_store %arg5[%c7_64, %c0_65, %c0_66], %164 {strides = array<i32>} : memref<8x16x128xbf16, #tpu.memory_space<vmem>>, vector<1x16x128xbf16>,
    return
  }
  func.func @transform_0(%arg0: i32) -> (i32, i32) {
    %c0_i32 = arith.constant 0 : i32
    %c0_i32_0 = arith.constant 0 : i32
    return %arg0, %c0_i32 : i32, i32
  }
  func.func @transform_1(%arg0: i32) -> (i32, i32) {
    %c0_i32 = arith.constant 0 : i32
    %c0_i32_0 = arith.constant 0 : i32
    %c0_i32_1 = arith.constant 0 : i32
    return %c0_i32, %c0_i32_0 : i32, i32
  }
  func.func @transform_2(%arg0: i32) -> (i32, i32) {
    %c0_i32 = arith.constant 0 : i32
    %c0_i32_0 = arith.constant 0 : i32
    %c0_i32_1 = arith.constant 0 : i32
    return %c0_i32, %c0_i32_0 : i32, i32
  }
  func.func @transform_3(%arg0: i32) -> (i32, i32, i32) {
    %c0_i32 = arith.constant 0 : i32
    %c0_i32_0 = arith.constant 0 : i32
    %c0_i32_1 = arith.constant 0 : i32
    return %c0_i32, %arg0, %c0_i32_0 : i32, i32, i32
  }
  func.func @transform_4(%arg0: i32) -> (i32, i32, i32) {
    %c0_i32 = arith.constant 0 : i32
    %c0_i32_0 = arith.constant 0 : i32
    %c0_i32_1 = arith.constant 0 : i32
    return %c0_i32, %arg0, %c0_i32_0 : i32, i32, i32
  }
}

</mosaic_0001>

<bundles_post_ra>
// kernel: _perturbation_impl.1
= control target key start
LH: loop header
LB: loop body
LE: loop exit
PB: predicated region body
PF: predicated region fallthrough
CT: control target
= control target key end

     0   :  { %9 = vsyncpa [#allocation3], 0  ;;  %s1331_s0 = inlined_call_operand.vmem [shape: bf16[16,128], index: 0, kind: input, shape index: {}]   ;;  %s1332_s1 = inlined_call_operand.hbm [shape: bf16[128,256], index: 1, kind: input, shape index: {}]   ;;  %s1333_s2 = inlined_call_operand.vmem [shape: bf16[1,256], index: 2, kind: input, shape index: {}]   ;;  %s1334_s3 = inlined_call_operand.vmem [shape: bf16[8,16,128], index: 3, kind: input, shape index: {}]   ;;  %s1335_s4 = inlined_call_operand.hbm [shape: bf16[8,16,128], index: 4, kind: output, shape index: {}]  }
   0x1   :  { %10 = vsyncpa [#allocation4], 0  ;;  %s937_s15 = smov [#allocation2]  }
   0x2   :  { %s18_s16 = sshll.u32 %s937_s15, 4  ;;  %s19_s16 = int_to_ptr.vmem [resolvable:$true] %s18_s16 }
   0x3   :  { %s901_s17 = scalar_lea.vmem %s19_s16, 2048  ;;  %p906_p1 = scmp.lt.s32.totalorder %s19_s16, %s19_s16 }
   0x4   :  { %p902_p0 = scmp.ne.s32.totalorder %s19_s16, %s901_s17  ;;  %p907_p2 = scmp.lt.s32.totalorder %s901_s17, %s901_s17 }
   0x6   :  { %p908_p3 = por %p907_p2, %p906_p1 }
   0x8   :  { %p909_p4 = pnand %p908_p3, %p902_p0 }
   0xa   :  { %912 = shalt.err (!%p909_p4)
}
   0xb   :  { %s938_s18 = smov 128   ;;  %s939_s19 = smov 8  }
   0xc   :  { %24 = dma.hbm_to_vmem [thread:$0]  %s1332_s1, 2048, %s19_s16, [#allocation3], %s938_s18, %s938_s18, %s939_s19  }
   0xd   :  { %933 = dma.done.wait [#allocation3], 2048  }
   0xe   :  { %934 = vsyncadd [#allocation3], 4294965248  ;;  %v940_v0 = vmov 0   ;;  %v799_v1 = vld [vmem:[#allocation2 + $0x74] ss:$8 sps:$4 sm:$0xff]   ;;  %v975_v17 = vld [vmem:[%s1331_s0] sm:$0xff]   ;;  %v54_v18 = vlaneseq }
   0xf   :  { %190 = vmatprep.mubr.bf16.mxu0 %v940_v0  ;;  %v801_v2 = vld [vmem:[#allocation2 + $0x70] ss:$8 sps:$4 sm:$0xff]   ;;  %158 = vmatprep.subr.bf16.mxu0 %v799_v1  ;;  %v802_v3 = vld [vmem:[#allocation2 + $0x64] ss:$8 sps:$4 sm:$0xff]   ;;  %v804_v4 = vld [vmem:[#allocation2 + $0x60] ss:$8 sps:$4 sm:$0xff]  }
  0x10   :  { %159 = vmatpush1.bf16.msra.mxu0 %v801_v2  ;;  %v805_v5 = vld [vmem:[#allocation2 + $0x54] ss:$8 sps:$4 sm:$0xff]   ;;  %v807_v6 = vld [vmem:[#allocation2 + $0x50] ss:$8 sps:$4 sm:$0xff]   ;;  %v808_v7 = vld [vmem:[#allocation2 + $0x44] ss:$8 sps:$4 sm:$0xff]  }
  0x11   :  { %160 = vmatprep.subr.bf16.mxu0 %v802_v3  ;;  %v810_v8 = vld [vmem:[#allocation2 + $0x40] ss:$8 sps:$4 sm:$0xff]   ;;  %v811_v9 = vld [vmem:[#allocation2 + $0x34] ss:$8 sps:$4 sm:$0xff]   ;;  %v813_v10 = vld [vmem:[#allocation2 + $0x30] ss:$8 sps:$4 sm:$0xff]  }
  0x12   :  { %v814_v11 = vld [vmem:[#allocation2 + $0x24] ss:$8 sps:$4 sm:$0xff]   ;;  %v816_v12 = vld [vmem:[#allocation2 + $0x20] ss:$8 sps:$4 sm:$0xff]   ;;  %v817_v13 = vld [vmem:[#allocation2 + $0x14] ss:$8 sps:$4 sm:$0xff]  }
  0x13   :  { %v819_v14 = vld [vmem:[#allocation2 + $0x10] ss:$8 sps:$4 sm:$0xff]   ;;  %v820_v15 = vld [vmem:[#allocation2 + $0x4] ss:$8 sps:$4 sm:$0xff]   ;;  %v822_v16 = vld [vmem:[#allocation2] ss:$8 sps:$4 sm:$0xff]  }
  0x14   :  { %161 = vmatpush1.bf16.msra.mxu0 %v804_v4  ;;  %v55_v19 = vshrl.u32 %v54_v18, 7  ;;  %v51_v20 = vld [vmem:[%s1333_s2] sm:$0x3]  ;;  %v991_v39 = vld [vmem:[%s1334_s3 + $0x8] sm:$0xff]   ;;  %v996_v40 = vld [vmem:[%s1334_s3 + $0x10] sm:$0xff]  }
  0x15   :  { %162 = vmatprep.subr.bf16.mxu0 %v805_v5  ;;  %v52_v22 = vunpack.c.l.bf16 %v51_v20  ;;  %v986_v38 = vld [vmem:[%s1334_s3] sm:$0xff]   ;;  %v1001_v41 = vld [vmem:[%s1334_s3 + $0x18] sm:$0xff]   ;;  %v1011_v43 = vld [vmem:[%s1334_s3 + $0x28] sm:$0xff]   ;;  %v724_v48 = vunpack.c.l.bf16 %v991_v39  ;;  %v733_v49 = vunpack.c.l.bf16 %v996_v40 }
  0x16   :  { %v60_v21 = vsub.s32 2, %v55_v19  ;;  %v56_v24 = vsub.s32 0, %v55_v19  ;;  %v1006_v42 = vld [vmem:[%s1334_s3 + $0x20] sm:$0xff]   ;;  %v715_v46 = vunpack.c.l.bf16 %v986_v38  ;;  %v742_v50 = vunpack.c.l.bf16 %v1001_v41  ;;  %v1020_v51 = vld [vmem:[%s1334_s3 + $0x30] sm:$0xff]   ;;  %v1027_v55 = vld [vmem:[%s1334_s3 + $0x38] sm:$0xff]   ;;  %s941_s3 = smov [#allocation5]  }
  0x17   :  { %v751_v52 = vunpack.c.l.bf16 %v1006_v42  ;;  %v760_v53 = vunpack.c.l.bf16 %v1011_v43  ;;  %v769_v57 = vunpack.c.l.bf16 %v1020_v51  ;;  %v778_v0 = vunpack.c.l.bf16 %v1027_v55  ;;  %s636_s13 = sshll.u32 %s941_s3, 4  ;;  %s637_s13 = int_to_ptr.vmem [resolvable:$true] %s636_s13 }
  0x18   :  { %163 = vmatpush1.bf16.msra.mxu0 %v807_v6  ;;  %v61_v23 = vrot.slane %v52_v22, %v60_v21  ;;  %v57_v34 = vrot.slane %v52_v22, %v56_v24  ;;  %s913_s14 = scalar_lea.vmem %s637_s13, 1024  ;;  %p918_p6 = scmp.lt.s32.totalorder %s637_s13, %s637_s13 }
  0x19   :  { %164 = vmatprep.subr.bf16.mxu0 %v808_v7  ;;  %p914_p5 = scmp.ne.s32.totalorder %s637_s13, %s913_s14  ;;  %p919_p7 = scmp.lt.s32.totalorder %s913_s14, %s913_s14 }
  0x1a   :  { %v71_v25 = vrot.slane %v61_v23, %v56_v24  ;;  %v67_v36 = vrot.slane %v57_v34, %v56_v24  ;;  %v716_v23 = vunpack.c.h.bf16 %v986_v38  ;;  %v725_v24 = vunpack.c.h.bf16 %v991_v39 }
  0x1b   :  { %p920_p8 = por %p919_p7, %p918_p6 }
  0x1c   :  { %165 = vmatpush1.bf16.msra.mxu0 %v810_v8 }
  0x1d   :  { %166 = vmatprep.subr.bf16.mxu0 %v811_v9  ;;  %p921_p9 = pnand %p920_p8, %p914_p5 }
  0x20   :  { %167 = vmatpush1.bf16.msra.mxu0 %v813_v10 }
  0x21   :  { %168 = vmatprep.subr.bf16.mxu0 %v814_v11 }
  0x24   :  { %169 = vmatpush1.bf16.msra.mxu0 %v816_v12 }
  0x25   :  { %170 = vmatprep.subr.bf16.mxu0 %v817_v13 }
  0x28   :  { %171 = vmatpush1.bf16.msra.mxu0 %v819_v14 }
  0x29   :  { %172 = vmatprep.subr.bf16.mxu0 %v820_v15 }
  0x2c   :  { %173 = vmatpush1.bf16.msra.mxu0 %v822_v16 }
  0x2f   :  { %191 = vmatmul.mubr.bf16.vlgmr.msra.gmra.mxu0 %v975_v17 }
  0xef   :  { %v192_v26 = vpop.f32.mrf.mxu0 }
  0xf0   :  { %v193_v45 = vadd.f32 %v192_v26, %v67_v36 }
  0xf1   :  { %v194_v27 = vpop.f32.mrf.mxu0 }
  0xf2   :  { %v195_v28 = vadd.f32 %v194_v27, %v71_v25  ;;  %v665_v56 = vclamps-f32 %v193_v45, 2.0 }
  0xf3   :  { %v981_v29 = vpop.f32.mrf.mxu0 }
  0xf4   :  { %v205_v30 = vmul.f32 0.5, %v195_v28  ;;  %v197_v28 = vadd.f32 %v981_v29, %v67_v36 }
  0xf5   :  { %v198_v32 = vpop.f32.mrf.mxu0 }
  0xf6   :  { %v207_v31 = vmul.f32 1.442695, %v205_v30  ;;  %v199_v33 = vadd.f32 %v198_v32, %v71_v25  ;;  %v734_v32 = vunpack.c.h.bf16 %v996_v40 }
  0xf8   :  { %825 = vpow2.f32 %v207_v31  ;;  %v206_v35 = vmul.f32 0.5, %v199_v33  ;;  %v743_v33 = vunpack.c.h.bf16 %v1001_v41 }
  0xfa   :  { %v209_v37 = vmul.f32 1.442695, %v206_v35  ;;  %v752_v35 = vunpack.c.h.bf16 %v1006_v42 }
  0xfc   :  { %827 = vpow2.f32 %v209_v37  ;;  %v761_v37 = vunpack.c.h.bf16 %v1011_v43 }
 0x105   :  { %v826_v44 = vpop.eup %825 }
 0x106   :  { %v211_v47 = vmax.f32 %v826_v44, 0.0  ;;  %v770_v44 = vunpack.c.h.bf16 %v1020_v51 }
 0x108   :  { %v213_v54 = vmin.f32 %v211_v47, 1.0 }
 0x109   :  { %v828_v18 = vpop.eup %827 }
 0x10a   :  { %v221_v58 = vmul.f32 %v715_v46, %v213_v54  ;;  %v272_v59 = vmul.f32 %v724_v48, %v213_v54  ;;  %v324_v60 = vmul.f32 %v733_v49, %v213_v54  ;;  %v376_v61 = vmul.f32 %v742_v50, %v213_v54 }
 0x10b   :  { %v428_v62 = vmul.f32 %v751_v52, %v213_v54  ;;  %v480_v63 = vmul.f32 %v760_v53, %v213_v54  ;;  %v532_v8 = vmul.f32 %v769_v57, %v213_v54  ;;  %v584_v11 = vmul.f32 %v778_v0, %v213_v54 }
 0x10c   :  { %v1031_v1 = vadd.f32 %v665_v56, %v221_v58  ;;  %v1033_v2 = vadd.f32 %v665_v56, %v272_v59  ;;  %v1035_v3 = vadd.f32 %v665_v56, %v324_v60  ;;  %v1037_v4 = vadd.f32 %v665_v56, %v376_v61 }
 0x10d   :  { %v1039_v5 = vadd.f32 %v665_v56, %v428_v62  ;;  %v1046_v15 = vadd.f32 %v665_v56, %v480_v63  ;;  %v1048_v20 = vadd.f32 %v665_v56, %v532_v8  ;;  %v1053_v27 = vadd.f32 %v665_v56, %v584_v11 }
 0x10e   :  { %v227_v6 = vand.u32 2147483647, %v1031_v1  ;;  %v278_v7 = vand.u32 2147483647, %v1033_v2  ;;  %v330_v9 = vand.u32 2147483647, %v1035_v3  ;;  %v779_v0 = vunpack.c.h.bf16 %v1027_v55 }
 0x10f   :  { %v382_v10 = vand.u32 2147483647, %v1037_v4  ;;  %v434_v14 = vand.u32 2147483647, %v1039_v5  ;;  %v486_v26 = vand.u32 2147483647, %v1046_v15 }
 0x110   :  { %v229_v12 = vsub.f32 0.0, %v227_v6  ;;  %v280_v13 = vsub.f32 0.0, %v278_v7  ;;  %v332_v16 = vsub.f32 0.0, %v330_v9  ;;  %v212_v31 = vmax.f32 %v828_v18, 0.0 }
 0x111   :  { %v384_v22 = vsub.f32 0.0, %v382_v10  ;;  %v436_v25 = vsub.f32 0.0, %v434_v14  ;;  %v538_v34 = vand.u32 2147483647, %v1048_v20  ;;  %v488_v29 = vsub.f32 0.0, %v486_v26 }
 0x112   :  { %v231_v19 = vmul.f32 1.442695, %v229_v12  ;;  %v282_v21 = vmul.f32 1.442695, %v280_v13  ;;  %v334_v30 = vmul.f32 1.442695, %v332_v16 }
 0x113   :  { %v386_v38 = vmul.f32 1.442695, %v384_v22  ;;  %v214_v39 = vmin.f32 %v212_v31, 1.0  ;;  %v438_v45 = vmul.f32 1.442695, %v436_v25  ;;  %v666_v46 = vclamps-f32 %v197_v28, 2.0 }
 0x114   :  { %829 = vpow2.f32 %v231_v19  ;;  %v590_v36 = vand.u32 2147483647, %v1053_v27  ;;  %v540_v48 = vsub.f32 0.0, %v538_v34  ;;  %v490_v51 = vmul.f32 1.442695, %v488_v29 }
 0x115   :  { %831 = vpow2.f32 %v282_v21  ;;  %v222_v40 = vmul.f32 %v716_v23, %v214_v39  ;;  %v273_v41 = vmul.f32 %v725_v24, %v214_v39  ;;  %v325_v47 = vmul.f32 %v734_v32, %v214_v39 }
 0x116   :  { %833 = vpow2.f32 %v334_v30  ;;  %v377_v49 = vmul.f32 %v743_v33, %v214_v39  ;;  %v429_v50 = vmul.f32 %v752_v35, %v214_v39  ;;  %v481_v42 = vmul.f32 %v761_v37, %v214_v39 }
 0x117   :  { %835 = vpow2.f32 %v386_v38  ;;  %v1063_v43 = vadd.f32 %v666_v46, %v222_v40  ;;  %v1065_v52 = vadd.f32 %v666_v46, %v273_v41  ;;  %v1067_v53 = vadd.f32 %v666_v46, %v325_v47 }
 0x118   :  { %v1069_v54 = vadd.f32 %v666_v46, %v377_v49  ;;  %v1071_v56 = vadd.f32 %v666_v46, %v429_v50  ;;  %v1073_v57 = vadd.f32 %v666_v46, %v481_v42  ;;  %837 = vpow2.f32 %v438_v45 }
 0x119   :  { %v228_v58 = vand.u32 2147483647, %v1063_v43  ;;  %v279_v59 = vand.u32 2147483647, %v1065_v52  ;;  %v533_v60 = vmul.f32 %v770_v44, %v214_v39  ;;  %v542_v61 = vmul.f32 1.442695, %v540_v48 }
 0x11a   :  { %v331_v62 = vand.u32 2147483647, %v1067_v53  ;;  %v383_v63 = vand.u32 2147483647, %v1069_v54  ;;  %v592_v6 = vsub.f32 0.0, %v590_v36  ;;  %839 = vpow2.f32 %v490_v51 }
 0x11b   :  { %v230_v7 = vsub.f32 0.0, %v228_v58  ;;  %v281_v8 = vsub.f32 0.0, %v279_v59  ;;  %v435_v9 = vand.u32 2147483647, %v1071_v56  ;;  %v487_v12 = vand.u32 2147483647, %v1073_v57 }
 0x11c   :  { %v333_v10 = vsub.f32 0.0, %v331_v62  ;;  %v385_v11 = vsub.f32 0.0, %v383_v63  ;;  %v1082_v18 = vadd.f32 %v666_v46, %v533_v60  ;;  %841 = vpow2.f32 %v542_v61 }
 0x11d   :  { %v233_v13 = vmul.f32 1.442695, %v230_v7  ;;  %v284_v14 = vmul.f32 1.442695, %v281_v8  ;;  %v437_v16 = vsub.f32 0.0, %v435_v9  ;;  %v585_v22 = vmul.f32 %v779_v0, %v214_v39 }
 0x11e   :  { %v336_v19 = vmul.f32 1.442695, %v333_v10  ;;  %v388_v21 = vmul.f32 1.442695, %v385_v11  ;;  %v489_v25 = vsub.f32 0.0, %v487_v12  ;;  %v1096_v34 = vunpack.c.l.bf16 %v975_v17 }
 0x11f   :  { %843 = vpow2.f32 %v233_v13  ;;  %v440_v23 = vmul.f32 1.442695, %v437_v16  ;;  %v539_v26 = vand.u32 2147483647, %v1082_v18  ;;  %v1089_v28 = vadd.f32 %v666_v46, %v585_v22 }
 0x120   :  { %845 = vpow2.f32 %v284_v14  ;;  %v594_v30 = vmul.f32 1.442695, %v592_v6  ;;  %v1099_v35 = vunpack.c.h.bf16 %v975_v17  ;;  %v225_v39 = vmax.f32 %v1031_v1, 0.0 }
 0x121   :  { %v1084_v55 = vpop.eup %829  ;;  %847 = vpow2.f32 %v336_v19  ;;  %v591_v32 = vand.u32 2147483647, %v1089_v28  ;;  %v276_v44 = vmax.f32 %v1033_v2, 0.0  ;;  %v492_v45 = vmul.f32 1.442695, %v489_v25 }
 0x122   :  { %v1086_v24 = vpop.eup %831  ;;  %849 = vpow2.f32 %v388_v21  ;;  %v235_v33 = vadd.f32 1.0, %v1084_v55  ;;  %v541_v29 = vsub.f32 0.0, %v539_v26  ;;  %v238_v46 = vmul.f32 -0.5, %v1084_v55 }
 0x123   :  { %v1091_v31 = vpop.eup %833  ;;  %851 = vpow2.f32 %v440_v23  ;;  %v286_v37 = vadd.f32 1.0, %v1086_v24  ;;  %v593_v36 = vsub.f32 0.0, %v591_v32  ;;  %v328_v17 = vmax.f32 %v1035_v3, 0.0 }
 0x124   :  { %v1102_v38 = vpop.eup %835  ;;  %853 = vpow2.f32 %v594_v30  ;;  %v338_v40 = vadd.f32 1.0, %v1091_v31  ;;  %v289_v48 = vmul.f32 -0.5, %v1086_v24  ;;  %v341_v50 = vmul.f32 -0.5, %v1091_v31 }
 0x125   :  { %v1108_v41 = vpop.eup %837  ;;  %855 = vlog2.f32 %v235_v33  ;;  %v390_v42 = vadd.f32 1.0, %v1102_v38  ;;  %v544_v58 = vmul.f32 1.442695, %v541_v29  ;;  %v241_v59 = vand.u32 2147483647, %v1084_v55 }
 0x126   :  { %857 = vlog2.f32 %v286_v37  ;;  %v596_v61 = vmul.f32 1.442695, %v593_v36  ;;  %v239_v62 = vadd.f32 1.0, %v238_v46  ;;  %v442_v63 = vadd.f32 1.0, %v1108_v41 }
 0x127   :  { %859 = vpow2.f32 %v492_v45  ;;  %v1118_v60 = vpop.eup %839  ;;  %v290_v0 = vadd.f32 1.0, %v289_v48  ;;  %v292_v6 = vand.u32 2147483647, %v1086_v24  ;;  %v393_v7 = vmul.f32 -0.5, %v1102_v38 }
 0x128   :  { %861 = vlog2.f32 %v338_v40  ;;  %v342_v11 = vadd.f32 1.0, %v341_v50  ;;  %v445_v16 = vmul.f32 -0.5, %v1108_v41  ;;  %v1135_v21 = vmul.f32 %v1084_v55, %v239_v62 }
 0x129   :  { %863 = vlog2.f32 %v390_v42  ;;  %v1123_v8 = vpop.eup %841  ;;  %v344_v23 = vand.u32 2147483647, %v1091_v31  ;;  %vm1141_vm0 = vcmp.lt.f32.partialorder %v241_v59, 0.0004427343  ;;  %v1146_v30 = vmul.f32 %v1086_v24, %v290_v0 }
 0x12a   :  { %865 = vlog2.f32 %v442_v63  ;;  %vm1148_vm1 = vcmp.lt.f32.partialorder %v292_v6, 0.0004427343  ;;  %v394_v33 = vadd.f32 1.0, %v393_v7  ;;  %v396_v37 = vand.u32 2147483647, %v1102_v38 }
 0x12b   :  { %867 = vpow2.f32 %v544_v58  ;;  %v1157_v29 = vmul.f32 %v1091_v31, %v342_v11  ;;  %v448_v24 = vand.u32 2147483647, %v1108_v41  ;;  %v446_v40 = vadd.f32 1.0, %v445_v16 }
 0x12c   :  { %v1127_v12 = vpop.eup %843  ;;  %869 = vpow2.f32 %v596_v61  ;;  %v494_v48 = vadd.f32 1.0, %v1118_v60  ;;  %v497_v50 = vmul.f32 -0.5, %v1118_v60  ;;  %vm1167_vm2 = vcmp.lt.f32.partialorder %v344_v23, 0.0004427343 }
 0x12d   :  { %v1132_v19 = vpop.eup %845  ;;  %v244_v22 = vadd.f32 1.0, %v1127_v12  ;;  %v247_v42 = vmul.f32 -0.5, %v1127_v12  ;;  %v250_v62 = vand.u32 2147483647, %v1127_v12  ;;  %v1177_v0 = vmul.f32 %v1102_v38, %v394_v33 }
 0x12e   :  { %v1139_v25 = vpop.eup %847  ;;  %v295_v55 = vadd.f32 1.0, %v1132_v19  ;;  %v298_v58 = vmul.f32 -0.5, %v1132_v19  ;;  %v301_v11 = vand.u32 2147483647, %v1132_v19  ;;  %vm1181_vm3 = vcmp.lt.f32.partialorder %v396_v37, 0.0004427343 }
 0x12f   :  { %v1154_v45 = vpop.eup %849  ;;  %871 = vlog2.f32 %v244_v22  ;;  %v347_v36 = vadd.f32 1.0, %v1139_v25  ;;  %v350_v63 = vmul.f32 -0.5, %v1139_v25  ;;  %v546_v23 = vadd.f32 1.0, %v1123_v8 }
 0x130   :  { %v1161_v46 = vpop.eup %851  ;;  %873 = vlog2.f32 %v295_v55  ;;  %v399_v31 = vadd.f32 1.0, %v1154_v45  ;;  %v402_v14 = vmul.f32 -0.5, %v1154_v45  ;;  %v1189_v38 = vmul.f32 %v1108_v41, %v446_v40 }
 0x131   :  { %875 = vlog2.f32 %v347_v36  ;;  %v1172_v61 = vpop.eup %853  ;;  %v451_v22 = vadd.f32 1.0, %v1161_v46  ;;  %v454_v33 = vmul.f32 -0.5, %v1161_v46  ;;  %v248_v37 = vadd.f32 1.0, %v247_v42 }
 0x132   :  { %v856_v7 = vpop.eup %855  ;;  %877 = vlog2.f32 %v399_v31  ;;  %v299_v10 = vadd.f32 1.0, %v298_v58  ;;  %vm1194_vm4 = vcmp.lt.f32.partialorder %v250_v62, 0.0004427343  ;;  %v351_v51 = vadd.f32 1.0, %v350_v63 }
 0x133   :  { %v858_v55 = vpop.eup %857  ;;  %v237_v36 = vmul.f32 0.6931472, %v856_v7  ;;  %879 = vlog2.f32 %v451_v22  ;;  %v353_v7 = vand.u32 2147483647, %v1139_v25  ;;  %vm1199_vm5 = vcmp.lt.f32.partialorder %v448_v24, 0.0004427343 }
 0x134   :  { %v1192_v13 = vpop.eup %859  ;;  %v288_v49 = vmul.f32 0.6931472, %v858_v55  ;;  %881 = vlog2.f32 %v494_v48  ;;  %v405_v62 = vand.u32 2147483647, %v1154_v45  ;;  %vm1210_vm6 = vcmp.lt.f32.partialorder %v301_v11, 0.0004427343 }
 0x135   :  { %v862_v31 = vpop.eup %861  ;;  %v243_v40 = vsel %vm1141_vm0, %v1135_v21, %v237_v36  ;;  %v403_v55 = vadd.f32 1.0, %v402_v14  ;;  %v455_v48 = vadd.f32 1.0, %v454_v33  ;;  %v249_v26 = vmul.f32 %v1127_v12, %v248_v37 }
 0x136   :  { %v864_v41 = vpop.eup %863  ;;  %v294_v42 = vsel %vm1148_vm1, %v1146_v30, %v288_v49  ;;  %v340_v58 = vmul.f32 0.6931472, %v862_v31  ;;  %v300_v21 = vmul.f32 %v1132_v19, %v299_v10  ;;  %v457_v32 = vand.u32 2147483647, %v1161_v46 }
 0x137   :  { %v866_v63 = vpop.eup %865  ;;  %v392_v24 = vmul.f32 0.6931472, %v864_v41  ;;  %v498_v49 = vadd.f32 1.0, %v497_v50  ;;  %v253_v11 = vadd.f32 %v243_v40, %v225_v39  ;;  %v304_v36 = vadd.f32 %v294_v42, %v276_v44 }
 0x138   :  { %v1214_v47 = vpop.eup %867  ;;  %v346_v14 = vsel %vm1167_vm2, %v1157_v29, %v340_v58  ;;  %v503_v33 = vadd.f32 1.0, %v1192_v13  ;;  %v352_v12 = vmul.f32 %v1139_v25, %v351_v51  ;;  %vm1230_vm7 = vcmp.lt.f32.partialorder %v353_v7, 0.0004427343 }
 0x139   :  { %v1219_v30 = vpop.eup %869  ;;  %vm1234_vm8 = vcmp.lt.f32.partialorder %v405_v62, 0.0004427343  ;;  %v444_v1 = vmul.f32 0.6931472, %v866_v63  ;;  %v398_v2 = vsel %vm1181_vm3, %v1177_v0, %v392_v24  ;;  %v404_v44 = vmul.f32 %v1154_v45, %v403_v55 }
 0x13a   :  { %v456_v29 = vmul.f32 %v1161_v46, %v455_v48  ;;  %883 = vlog2.f32 %v503_v33  ;;  %v356_v50 = vadd.f32 %v346_v14, %v328_v17  ;;  %vm1245_vm9 = vcmp.lt.f32.partialorder %v457_v32, 0.0004427343 }
 0x13b   :  { %v1250_v37 = vmul.f32 %v1118_v60, %v498_v49  ;;  %v255_v0 = vadd.f32 %v253_v11, %v1096_v34  ;;  %v306_v45 = vadd.f32 %v304_v36, %v1096_v34  ;;  %885 = vlog2.f32 %v546_v23 }
 0x13c   :  { %v872_v39 = vpop.eup %871  ;;  %v1356_v3 = vmax.f32 %v1037_v4, 0.0  ;;  %v450_v41 = vsel %vm1199_vm5, %v1189_v38, %v444_v1  ;;  %v1357_v40 = vand.u32 2147483647, %v1118_v60  ;;  %v1360_v23 = vmax.f32 %v1063_v43, 0.0 }
 0x13d   :  { %v874_v51 = vpop.eup %873  ;;  %v246_v25 = vmul.f32 0.6931472, %v872_v39  ;;  %v506_v4 = vmul.f32 -0.5, %v1192_v13  ;;  %v555_v63 = vadd.f32 1.0, %v1214_v47  ;;  %v1361_v6 = vmax.f32 %v1065_v52, 0.0 }
 0x13e   :  { %v876_v31 = vpop.eup %875  ;;  %v297_v16 = vmul.f32 0.6931472, %v874_v51  ;;  %v408_v17 = vadd.f32 %v398_v2, %v1356_v3  ;;  %vm1263_vm10 = vcmp.lt.f32.partialorder %v1357_v40, 0.0004427343  ;;  %v358_v24 = vadd.f32 %v356_v50, %v1096_v34 }
 0x13f   :  { %v252_v46 = vsel %vm1194_vm4, %v249_v26, %v246_v25  ;;  %v349_v7 = vmul.f32 0.6931472, %v876_v31  ;;  %v878_v58 = vpop.eup %877  ;;  %v1362_v26 = vmax.f32 %v1067_v53, 0.0  ;;  %887 = vlog2.f32 %v555_v63 }
 0x140   :  { %v254_v62 = vadd.f32 %v252_v46, %v1360_v23  ;;  %v303_v9 = vsel %vm1210_vm6, %v300_v21, %v297_v16  ;;  %v401_v55 = vmul.f32 0.6931472, %v878_v58  ;;  %v880_v48 = vpop.eup %879  ;;  %v1363_v21 = vmax.f32 %v1039_v5, 0.0 }
 0x141   :  { %v305_v38 = vadd.f32 %v303_v9, %v1361_v6  ;;  %v355_v60 = vsel %vm1230_vm7, %v352_v12, %v349_v7  ;;  %v882_v49 = vpop.eup %881  ;;  %v453_v36 = vmul.f32 0.6931472, %v880_v48  ;;  %v549_v14 = vmul.f32 -0.5, %v1123_v8 }
 0x142   :  { %v256_v43 = vadd.f32 %v254_v62, %v1099_v35  ;;  %v357_v22 = vadd.f32 %v355_v60, %v1362_v26  ;;  %v460_v32 = vadd.f32 %v450_v41, %v1363_v21  ;;  %v407_v11 = vsel %vm1234_vm8, %v404_v44, %v401_v55 }
 0x143   :  { %v307_v52 = vadd.f32 %v305_v38, %v1099_v35  ;;  %v1364_v10 = vmax.f32 %v1069_v54, 0.0  ;;  %v496_v1 = vmul.f32 0.6931472, %v882_v49  ;;  %v410_v5 = vadd.f32 %v408_v17, %v1096_v34 }
 0x144   :  { %v720_v33 = vpack.c.bf16 %v256_v43, %v255_v0  ;;  %v359_v12 = vadd.f32 %v357_v22, %v1099_v35  ;;  %v459_v2 = vsel %vm1245_vm9, %v456_v29, %v453_v36  ;;  %v509_v51 = vand.u32 2147483647, %v1192_v13 }
 0x145   :  { %v409_v53 = vadd.f32 %v407_v11, %v1364_v10  ;;  %v729_v39 = vpack.c.bf16 %v307_v52, %v306_v45  ;;  %v1365_v25 = vmax.f32 %v1071_v56, 0.0  ;;  %v507_v31 = vadd.f32 1.0, %v506_v4 }
 0x146   :  { %721 = vst [vmem:[#allocation5] sm:$0xff] %v720_v33   ;;  %v738_v19 = vpack.c.bf16 %v359_v12, %v358_v24  ;;  %v462_v54 = vadd.f32 %v460_v32, %v1096_v34  ;;  %v550_v0 = vadd.f32 1.0, %v549_v14  ;;  %v558_v16 = vmul.f32 -0.5, %v1214_v47 }
 0x147   :  { %v411_v44 = vadd.f32 %v409_v53, %v1099_v35  ;;  %v461_v50 = vadd.f32 %v459_v2, %v1365_v25  ;;  %730 = vst [vmem:[#allocation5 + $0x8] sm:$0xff] %v729_v39   ;;  %v598_v45 = vadd.f32 1.0, %v1172_v61  ;;  %v502_v46 = vsel %vm1263_vm10, %v1250_v37, %v496_v1  ;;  %v884_v7 = vpop.eup %883 }
 0x148   :  { %739 = vst [vmem:[#allocation5 + $0x10] sm:$0xff] %v738_v19   ;;  %v607_v56 = vadd.f32 1.0, %v1219_v30  ;;  %v484_v3 = vmax.f32 %v1046_v15, 0.0  ;;  %v552_v17 = vand.u32 2147483647, %v1123_v8  ;;  %v508_v58 = vmul.f32 %v1192_v13, %v507_v31  ;;  %v886_v23 = vpop.eup %885 }
 0x149   :  { %v747_v29 = vpack.c.bf16 %v411_v44, %v410_v5  ;;  %v463_v59 = vadd.f32 %v461_v50, %v1099_v35  ;;  %889 = vlog2.f32 %v598_v45  ;;  %v505_v40 = vmul.f32 0.6931472, %v884_v7 }
 0x14a   :  { %891 = vlog2.f32 %v607_v56  ;;  %v485_v62 = vmax.f32 %v1073_v57, 0.0  ;;  %vm510_vm11 = vcmp.lt.f32.partialorder %v509_v51, 0.0004427343  ;;  %v512_v42 = vadd.f32 %v502_v46, %v484_v3 }
 0x14b   :  { %748 = vst [vmem:[#allocation5 + $0x18] sm:$0xff] %v747_v29   ;;  %v756_v41 = vpack.c.bf16 %v463_v59, %v462_v54  ;;  %v511_v37 = vsel %vm510_vm11, %v508_v58, %v505_v40  ;;  %v548_v9 = vmul.f32 0.6931472, %v886_v23  ;;  %v551_v4 = vmul.f32 %v1123_v8, %v550_v0 }
 0x14c   :  { %v559_v15 = vadd.f32 1.0, %v558_v16  ;;  %v513_v63 = vadd.f32 %v511_v37, %v485_v62  ;;  %vm553_vm12 = vcmp.lt.f32.partialorder %v552_v17, 0.0004427343  ;;  %v561_v6 = vand.u32 2147483647, %v1214_v47  ;;  %v888_v60 = vpop.eup %887 }
 0x14d   :  { %757 = vst [vmem:[#allocation5 + $0x20] sm:$0xff] %v756_v41   ;;  %v554_v38 = vsel %vm553_vm12, %v551_v4, %v548_v9  ;;  %v536_v13 = vmax.f32 %v1048_v20, 0.0  ;;  %v514_v24 = vadd.f32 %v512_v42, %v1096_v34  ;;  %v601_v55 = vmul.f32 -0.5, %v1172_v61 }
 0x14e   :  { %v515_v57 = vadd.f32 %v513_v63, %v1099_v35  ;;  %v557_v48 = vmul.f32 0.6931472, %v888_v60  ;;  %v560_v43 = vmul.f32 %v1214_v47, %v559_v15  ;;  %v610_v8 = vmul.f32 -0.5, %v1219_v30 }
 0x14f   :  { %v537_v26 = vmax.f32 %v1082_v18, 0.0  ;;  %vm562_vm13 = vcmp.lt.f32.partialorder %v561_v6, 0.0004427343  ;;  %v564_v21 = vadd.f32 %v554_v38, %v536_v13  ;;  %v602_v20 = vadd.f32 1.0, %v601_v55 }
 0x150   :  { %v765_v22 = vpack.c.bf16 %v515_v57, %v514_v24  ;;  %v563_v32 = vsel %vm562_vm13, %v560_v43, %v557_v48  ;;  %v604_v52 = vand.u32 2147483647, %v1172_v61  ;;  %v611_v11 = vadd.f32 1.0, %v610_v8 }
 0x151   :  { %v565_v49 = vadd.f32 %v563_v32, %v537_v26  ;;  %v566_v36 = vadd.f32 %v564_v21, %v1096_v34  ;;  %v613_v47 = vand.u32 2147483647, %v1219_v30  ;;  %v603_v53 = vmul.f32 %v1172_v61, %v602_v20 }
 0x152   :  { %766 = vst [vmem:[#allocation5 + $0x28] sm:$0xff] %v765_v22   ;;  %v588_v1 = vmax.f32 %v1053_v27, 0.0  ;;  %vm605_vm14 = vcmp.lt.f32.partialorder %v604_v52, 0.0004427343  ;;  %v612_v5 = vmul.f32 %v1219_v30, %v611_v11  ;;  %v589_v2 = vmax.f32 %v1089_v28, 0.0 }
 0x153   :  { %v567_v14 = vadd.f32 %v565_v49, %v1099_v35  ;;  %vm614_vm15 = vcmp.lt.f32.partialorder %v613_v47, 0.0004427343 }
 0x155   :  { %v774_v10 = vpack.c.bf16 %v567_v14, %v566_v36 }
 0x156   :  { %v890_v33 = vpop.eup %889 }
 0x157   :  { %v892_v12 = vpop.eup %891  ;;  %v600_v18 = vmul.f32 0.6931472, %v890_v33  ;;  %775 = vst [vmem:[#allocation5 + $0x30] sm:$0xff] %v774_v10  }
 0x158   :  { %v609_v39 = vmul.f32 0.6931472, %v892_v12 }
 0x159   :  { %v606_v51 = vsel %vm605_vm14, %v603_v53, %v600_v18 }
 0x15a   :  { %v615_v19 = vsel %vm614_vm15, %v612_v5, %v609_v39  ;;  %v616_v44 = vadd.f32 %v606_v51, %v588_v1 }
 0x15b   :  { %v617_v25 = vadd.f32 %v615_v19, %v589_v2 }
 0x15c   :  { %v618_v50 = vadd.f32 %v616_v44, %v1096_v34 }
 0x15d   :  { %v619_v61 = vadd.f32 %v617_v25, %v1099_v35 }
 0x15f   :  { %v783_v31 = vpack.c.bf16 %v619_v61, %v618_v50 }
 0x161   :  { %784 = vst [vmem:[#allocation5 + $0x38] sm:$0xff] %v783_v31  }
 0x162   :  { %924 = shalt.err (!%p921_p9)
}
 0x163   :  { %s942_s15 = smov 64   ;;  %s943_s16 = smov 4  }
 0x164   :  { %642 = dma.vmem_to_hbm [thread:$0]  %s637_s13, 1024, %s1335_s4, [#allocation4], %s942_s15, %s942_s15, %s943_s16  }
 0x165   :  { %935 = dma.done.wait [#allocation4], 1024  }
 0x166   :  { %936 = vsyncadd [#allocation4], 4294966272 }
 0x167   :  { %646 = vsyncpa [#allocation3], 1 }
 0x168   :  { %647 = vsyncpa [#allocation4], 1 }

</bundles_post_ra>
